<compile_context>
chip_gen: v7x
topology: tpu7x:2x2x1
jax: 0.10.0
libtpu: 0.0.40
codegen_flags: <defaults>
</compile_context>

<pallas_src>
import math

import jax
import jax.numpy as jnp
from jax.experimental import pallas as pl
from jax.experimental.pallas import tpu as pltpu


def _round_up(x, m):
    return ((x + m - 1) // m) * m


def _pad_to(a, shape):
    pads = [(0, t - s) for s, t in zip(a.shape, shape)]
    return jnp.pad(a, pads)


_EPS = 1e-12
_VMEM_LIMIT = 32 * 1024 * 1024  # explicit: > v5e's 16 MiB default, safe on v7x


# ----------------------------------------------------------------------------
# Kernel 1 (hot path): fully fused CLIP step.
#   image proj + L2 norm, text mean-pool + proj + L2 norm, scaled similarity.
# One pallas_call, no intermediate HBM round-trips.
# ----------------------------------------------------------------------------
def _clip_fused_kernel(scale_ref, x_img_ref, emb_ref, w_img_ref, w_txt_ref,
                       img_out_ref, txt_out_ref, logits_ref):
    # Image branch: (B, Din) @ (Din, E_pad) on the MXU, f32 accumulate.
    img = jnp.dot(x_img_ref[...], w_img_ref[...],
                  preferred_element_type=jnp.float32)
    img = img * jax.lax.rsqrt(
        jnp.sum(img * img, axis=-1, keepdims=True) + _EPS)

    # Text branch: mean-pool token embeddings (B, T, Dt_pad) -> (B, Dt_pad)
    # inside the kernel (sublane reduce), then project + normalize.
    pooled = jnp.mean(emb_ref[...], axis=1)
    txt = jnp.dot(pooled, w_txt_ref[...],
                  preferred_element_type=jnp.float32)
    txt = txt * jax.lax.rsqrt(
        jnp.sum(txt * txt, axis=-1, keepdims=True) + _EPS)

    img_out_ref[...] = img.astype(img_out_ref.dtype)
    txt_out_ref[...] = txt.astype(txt_out_ref.dtype)

    # logits = exp(logit_scale) * img @ txt.T, expressed as a dot_general
    # contraction on the last dims (no transposed copy of txt).
    sims = jax.lax.dot_general(img, txt,
                               dimension_numbers=(((1,), (1,)), ((), ())),
                               preferred_element_type=jnp.float32)
    logits_ref[...] = (scale_ref[0, 0] * sims).astype(logits_ref.dtype)


def clip_fused(scale_exp, x_img, emb, w_img_p, w_txt_p):
    """scale_exp: (1,1) f32 (already exponentiated), x_img: (B, Din),
    emb: (B, T, Dt_pad), w_img_p: (Din, E_pad), w_txt_p: (Dt_pad, E_pad)."""
    B, Din = x_img.shape
    Bt, T, Dt = emb.shape
    assert B == Bt
    E = w_img_p.shape[1]
    assert w_txt_p.shape == (Dt, E)
    return pl.pallas_call(
        _clip_fused_kernel,
        out_shape=(
            jax.ShapeDtypeStruct((B, E), jnp.float32),   # image features (padded E)
            jax.ShapeDtypeStruct((B, E), jnp.float32),   # text features (padded E)
            jax.ShapeDtypeStruct((B, B), jnp.float32),   # logits
        ),
        in_specs=[
            pl.BlockSpec(memory_space=pltpu.MemorySpace.SMEM),  # scale_exp
            pl.BlockSpec(memory_space=pltpu.MemorySpace.VMEM),  # image (flat)
            pl.BlockSpec(memory_space=pltpu.MemorySpace.VMEM),  # token embeds
            pl.BlockSpec(memory_space=pltpu.MemorySpace.VMEM),  # w_img
            pl.BlockSpec(memory_space=pltpu.MemorySpace.VMEM),  # w_txt
        ],
        out_specs=(
            pl.BlockSpec(memory_space=pltpu.MemorySpace.VMEM),
            pl.BlockSpec(memory_space=pltpu.MemorySpace.VMEM),
            pl.BlockSpec(memory_space=pltpu.MemorySpace.VMEM),
        ),
        compiler_params=pltpu.CompilerParams(vmem_limit_bytes=_VMEM_LIMIT),
    )(scale_exp, x_img, emb, w_img_p, w_txt_p)


# ----------------------------------------------------------------------------
# Kernel 2 (module-API path): row-tiled linear projection + L2 normalization.
# Weight block resident, activations row-tiled & pipelined; "parallel" row
# axis lets megacore shard the batch on v7x.
# ----------------------------------------------------------------------------
def _encode_norm_kernel(x_ref, w_ref, o_ref):
    feats = jnp.dot(x_ref[...], w_ref[...], preferred_element_type=jnp.float32)
    inv_norm = jax.lax.rsqrt(
        jnp.sum(feats * feats, axis=-1, keepdims=True) + _EPS)
    o_ref[...] = (feats * inv_norm).astype(o_ref.dtype)


def encode_and_normalize(x, w, *, tm=256):
    """x: (B, Din) f32, w: (Din, E_pad) f32 -> (B, E_pad) f32, rows unit-norm."""
    B, Din = x.shape
    Din2, E = w.shape
    assert Din == Din2
    b_pad = _round_up(max(B, 1), 8)
    TM = min(tm, b_pad)
    b_pad = _round_up(b_pad, TM)
    if b_pad != B:
        x = jnp.pad(x, ((0, b_pad - B), (0, 0)))
    out = pl.pallas_call(
        _encode_norm_kernel,
        out_shape=jax.ShapeDtypeStruct((b_pad, E), jnp.float32),
        grid=(b_pad // TM,),
        in_specs=[
            pl.BlockSpec((TM, Din), lambda i: (i, 0)),   # activation tiles
            pl.BlockSpec((Din, E), lambda i: (0, 0)),    # resident weight
        ],
        out_specs=pl.BlockSpec((TM, E), lambda i: (i, 0)),
        compiler_params=pltpu.CompilerParams(
            dimension_semantics=("parallel",),
            vmem_limit_bytes=_VMEM_LIMIT),
    )(x, w)
    return out[:B]


# ----------------------------------------------------------------------------
# Kernel 3 (module-API path): scaled similarity logits.
# ----------------------------------------------------------------------------
def _clip_logits_kernel(scale_ref, img_ref, txt_ref, o_ref):
    sims = jax.lax.dot_general(img_ref[...], txt_ref[...],
                               dimension_numbers=(((1,), (1,)), ((), ())),
                               preferred_element_type=jnp.float32)
    o_ref[...] = (scale_ref[0, 0] * sims).astype(o_ref.dtype)


def clip_logits(scale_exp, img_feat, txt_feat):
    Bi, E = img_feat.shape
    Bt, E2 = txt_feat.shape
    assert E == E2
    return pl.pallas_call(
        _clip_logits_kernel,
        out_shape=jax.ShapeDtypeStruct((Bi, Bt), jnp.float32),
        in_specs=[
            pl.BlockSpec(memory_space=pltpu.MemorySpace.SMEM),
            pl.BlockSpec(memory_space=pltpu.MemorySpace.VMEM),
            pl.BlockSpec(memory_space=pltpu.MemorySpace.VMEM),
        ],
        out_specs=pl.BlockSpec(memory_space=pltpu.MemorySpace.VMEM),
        compiler_params=pltpu.CompilerParams(vmem_limit_bytes=_VMEM_LIMIT),
    )(scale_exp, img_feat, txt_feat)


# ----------------------------------------------------------------------------
# CustomCLIP wrapper (synthetic clip_model: linear encoders, zero-padded to
# lane-dense widths at init so kernels never issue masked lane stores).
# ----------------------------------------------------------------------------
class CustomCLIPPallas:
    def __init__(self, key, *, channels=4, spatial=16, vocab=64,
                 txt_embed=48, embed_dim=32):
        k_img, k_tok, k_txt = jax.random.split(key, 3)
        d_img = channels * spatial * spatial
        self.d_img = d_img
        self.E = embed_dim
        self.E_pad = _round_up(embed_dim, 128)
        self.Dt = txt_embed
        self.Dt_pad = _round_up(txt_embed, 128)

        # Deterministic synthetic "clip_model" weights (logical shapes).
        self.w_img = (jax.random.normal(k_img, (d_img, embed_dim), jnp.float32)
                      / math.sqrt(d_img))
        self.tok_emb = (jax.random.normal(k_tok, (vocab, txt_embed), jnp.float32)
                        / math.sqrt(txt_embed))
        self.w_txt = (jax.random.normal(k_txt, (txt_embed, embed_dim), jnp.float32)
                      / math.sqrt(txt_embed))

        # Zero-padded lane-dense copies used by the kernels (padded rows/cols
        # are exactly zero, so norms and logits are unchanged).
        self.w_img_p = _pad_to(self.w_img, (d_img, self.E_pad))
        self.tok_emb_p = _pad_to(self.tok_emb, (vocab, self.Dt_pad))
        self.w_txt_p = _pad_to(self.w_txt, (self.Dt_pad, self.E_pad))

        # CLIP's learned temperature init: log(1 / 0.07).  exp() hoisted to
        # init so no per-launch EUP exp is needed.
        self.logit_scale = jnp.float32(math.log(1.0 / 0.07))
        self.scale_exp = jnp.exp(self.logit_scale).reshape(1, 1)
        self.dtype = jnp.float32

    def forward(self, image):
        # TODO(synk): CustomCLIP.forward raises NotImplementedError in the
        # reference module; nothing to lower.
        raise NotImplementedError()

    def tokenize(self, text):
        # TODO(synk): clip.tokenize is an external BPE tokenizer with no
        # Pallas equivalent; token ids are taken directly as input instead.
        raise NotImplementedError()

    # ---- fused hot path: one pallas_call for the whole CLIP step ----------
    def encode_image_text(self, image, tokens):
        B = image.shape[0]
        x = image.reshape(B, -1).astype(jnp.float32)
        emb = jnp.take(self.tok_emb_p, tokens, axis=0)   # (B, T, Dt_pad)
        img_p, txt_p, logits = clip_fused(self.scale_exp, x, emb,
                                          self.w_img_p, self.w_txt_p)
        return img_p[:, :self.E], txt_p[:, :self.E], logits

    # ---- module-API paths (separate encoders, as in the PyTorch spec) -----
    def encode_image(self, image):
        B = image.shape[0]
        x = image.reshape(B, -1).astype(jnp.float32)
        feats = encode_and_normalize(x, self.w_img_p)
        return feats[:, :self.E]

    def encode_text(self, tokens):
        emb = jnp.take(self.tok_emb_p, tokens, axis=0)   # (B, T, Dt_pad)
        pooled = jnp.mean(emb, axis=1)                   # (B, Dt_pad)
        feats = encode_and_normalize(pooled, self.w_txt_p)
        return feats[:, :self.E]

    def logits(self, image_features, text_features):
        return clip_logits(self.scale_exp, image_features, text_features)


# ----------------------------------------------------------------------------
if __name__ == "__main__":
    key = jax.random.PRNGKey(0)
    k_model, k_img, k_txt = jax.random.split(key, 3)

    model = CustomCLIPPallas(k_model, channels=4, spatial=16,
                             vocab=64, txt_embed=48, embed_dim=32)

    # Small deterministic inputs.
    image = jax.random.normal(k_img, (2, 4, 16, 16), jnp.float32)   # NCHW
    tokens = jax.random.randint(k_txt, (2, 8), 0, 64, jnp.int32)

    # Fused path: one pallas_call produces both feature sets and the logits.
    img_feat, txt_feat, logits = model.encode_image_text(image, tokens)

    # Module-API path (separate kernels), for parity with the PyTorch spec.
    img_feat_s = model.encode_image(image)      # (2, 32), rows unit-norm
    txt_feat_s = model.encode_text(tokens)      # (2, 32), rows unit-norm
    logits_s = model.logits(img_feat_s, txt_feat_s)   # (2, 2)

    jax.block_until_ready((img_feat, txt_feat, logits,
                           img_feat_s, txt_feat_s, logits_s))

    # Sanity checks against pure-JAX reference (logical, unpadded weights).
    ref_img = image.reshape(2, -1) @ model.w_img
    ref_img = ref_img / jnp.linalg.norm(ref_img, axis=-1, keepdims=True)
    ref_txt = jnp.mean(jnp.take(model.tok_emb, tokens, axis=0), axis=1) @ model.w_txt
    ref_txt = ref_txt / jnp.linalg.norm(ref_txt, axis=-1, keepdims=True)
    ref_logits = jnp.exp(model.logit_scale) * (ref_img @ ref_txt.T)

    assert jnp.allclose(img_feat, ref_img, atol=1e-4), "fused image feats mismatch"
    assert jnp.allclose(txt_feat, ref_txt, atol=1e-4), "fused text feats mismatch"
    assert jnp.allclose(logits, ref_logits, atol=1e-3), "fused logits mismatch"
    assert jnp.allclose(img_feat_s, ref_img, atol=1e-4), "image feats mismatch"
    assert jnp.allclose(txt_feat_s, ref_txt, atol=1e-4), "text feats mismatch"
    assert jnp.allclose(logits_s, ref_logits, atol=1e-3), "logits mismatch"
    assert jnp.allclose(jnp.linalg.norm(img_feat, axis=-1), 1.0, atol=1e-4)
    assert jnp.allclose(jnp.linalg.norm(txt_feat, axis=-1), 1.0, atol=1e-4)

    print("KERNEL_OK")
</pallas_src>

<mosaic_0001>
module attributes {stable_mosaic.version = 11 : i64} {
  func.func @_clip_fused_kernel(%arg0: memref<1x1xf32, #tpu.memory_space<smem>>, %arg1: memref<2x1024xf32, #tpu.memory_space<vmem>>, %arg2: memref<2x8x128xf32, #tpu.memory_space<vmem>>, %arg3: memref<1024x128xf32, #tpu.memory_space<vmem>>, %arg4: memref<128x128xf32, #tpu.memory_space<vmem>>, %arg5: memref<2x128xf32, #tpu.memory_space<vmem>>, %arg6: memref<2x128xf32, #tpu.memory_space<vmem>>, %arg7: memref<2x2xf32, #tpu.memory_space<vmem>>) attributes {dimension_semantics = [], scalar_prefetch = 0 : i64, scratch_operands = 0 : i64, tpu.core_type = #tpu.core_type<tc>} {
    %c0 = arith.constant 0 : index
    %c0_0 = arith.constant 0 : index
    %0 = vector.load %arg1[%c0, %c0_0] : memref<2x1024xf32, #tpu.memory_space<vmem>>, vector<2x1024xf32>
    %c0_1 = arith.constant 0 : index
    %c0_2 = arith.constant 0 : index
    %1 = vector.load %arg3[%c0_1, %c0_2] : memref<1024x128xf32, #tpu.memory_space<vmem>>, vector<1024x128xf32>
    %cst = arith.constant dense<0.000000e+00> : vector<2x128xf32>
    %2 = tpu.matmul %0, %1, %cst {dimension_numbers = #tpu.dot_dimension_numbers<[1], [0], [0], [1], [0, 0, 1, 1], [], []>} : vector<2x1024xf32>, vector<1024x128xf32>, vector<2x128xf32> -> vector<2x128xf32>
    %3 = arith.mulf %2, %2 : vector<2x128xf32>
    %cst_3 = arith.constant dense<0.000000e+00> : vector<2xf32>
    %4 = vector.multi_reduction <add>, %3, %cst_3 [1] : vector<2x128xf32> to vector<2xf32>
    %5 = vector.shape_cast %4 : vector<2xf32> to vector<2x1xf32>
    %cst_4 = arith.constant 9.99999996E-13 : f32
    %6 = vector.broadcast %cst_4 : f32 to vector<2x1xf32>
    %7 = arith.addf %5, %6 : vector<2x1xf32>
    %8 = math.rsqrt %7 : vector<2x1xf32>
    %9 = vector.broadcast %8 : vector<2x1xf32> to vector<2x128xf32>
    %10 = arith.mulf %2, %9 : vector<2x128xf32>
    %c0_5 = arith.constant 0 : index
    %c0_6 = arith.constant 0 : index
    %c0_7 = arith.constant 0 : index
    %11 = vector.load %arg2[%c0_5, %c0_6, %c0_7] : memref<2x8x128xf32, #tpu.memory_space<vmem>>, vector<2x8x128xf32>
    %cst_8 = arith.constant dense<0.000000e+00> : vector<2x128xf32>
    %12 = vector.multi_reduction <add>, %11, %cst_8 [1] : vector<2x8x128xf32> to vector<2x128xf32>
    %cst_9 = arith.constant 8.000000e+00 : f32
    %13 = vector.broadcast %cst_9 : f32 to vector<2x128xf32>
    %14 = arith.divf %12, %13 : vector<2x128xf32>
    %c0_10 = arith.constant 0 : index
    %c0_11 = arith.constant 0 : index
    %15 = vector.load %arg4[%c0_10, %c0_11] : memref<128x128xf32, #tpu.memory_space<vmem>>, vector<128x128xf32>
    %cst_12 = arith.constant dense<0.000000e+00> : vector<2x128xf32>
    %16 = tpu.matmul %14, %15, %cst_12 {dimension_numbers = #tpu.dot_dimension_numbers<[1], [0], [0], [1], [0, 0, 1, 1], [], []>} : vector<2x128xf32>, vector<128x128xf32>, vector<2x128xf32> -> vector<2x128xf32>
    %17 = arith.mulf %16, %16 : vector<2x128xf32>
    %cst_13 = arith.constant dense<0.000000e+00> : vector<2xf32>
    %18 = vector.multi_reduction <add>, %17, %cst_13 [1] : vector<2x128xf32> to vector<2xf32>
    %19 = vector.shape_cast %18 : vector<2xf32> to vector<2x1xf32>
    %cst_14 = arith.constant 9.99999996E-13 : f32
    %20 = vector.broadcast %cst_14 : f32 to vector<2x1xf32>
    %21 = arith.addf %19, %20 : vector<2x1xf32>
    %22 = math.rsqrt %21 : vector<2x1xf32>
    %23 = vector.broadcast %22 : vector<2x1xf32> to vector<2x128xf32>
    %24 = arith.mulf %16, %23 : vector<2x128xf32>
    %c0_15 = arith.constant 0 : index
    %c0_16 = arith.constant 0 : index
    %25 = vector.load %arg5[%c0_15, %c0_16] : memref<2x128xf32, #tpu.memory_space<vmem>>, vector<2x128xf32>
    tpu.vector_store %arg5[%c0_15, %c0_16], %10 {strides = array<i32>} : memref<2x128xf32, #tpu.memory_space<vmem>>, vector<2x128xf32>,
    %c0_17 = arith.constant 0 : index
    %c0_18 = arith.constant 0 : index
    %26 = vector.load %arg6[%c0_17, %c0_18] : memref<2x128xf32, #tpu.memory_space<vmem>>, vector<2x128xf32>
    tpu.vector_store %arg6[%c0_17, %c0_18], %24 {strides = array<i32>} : memref<2x128xf32, #tpu.memory_space<vmem>>, vector<2x128xf32>,
    %cst_19 = arith.constant dense<0.000000e+00> : vector<2x2xf32>
    %27 = tpu.matmul %10, %24, %cst_19 {dimension_numbers = #tpu.dot_dimension_numbers<[1], [1], [0], [0], [0, 0, 1, 0], [], []>} : vector<2x128xf32>, vector<2x128xf32>, vector<2x2xf32> -> vector<2x2xf32>
    %c0_20 = arith.constant 0 : index
    %c0_21 = arith.constant 0 : index
    %28 = memref.load %arg0[%c0_20, %c0_21] : memref<1x1xf32, #tpu.memory_space<smem>>
    %29 = vector.broadcast %28 : f32 to vector<2x2xf32>
    %30 = arith.mulf %29, %27 : vector<2x2xf32>
    %c0_22 = arith.constant 0 : index
    %c0_23 = arith.constant 0 : index
    %31 = vector.load %arg7[%c0_22, %c0_23] : memref<2x2xf32, #tpu.memory_space<vmem>>, vector<2x2xf32>
    tpu.vector_store %arg7[%c0_22, %c0_23], %30 {strides = array<i32>} : memref<2x2xf32, #tpu.memory_space<vmem>>, vector<2x2xf32>,
    return
  }
}

</mosaic_0001>

<bundles_post_ra>
// kernel: tpu_custom_call.1
= control target key start
LH: loop header
LB: loop body
LE: loop exit
PB: predicated region body
PF: predicated region fallthrough
CT: control target
= control target key end

     0   :  { %14 = vsyncpa [#allocation4], 0  ;;  %s1476_s0 = inlined_call_operand.<no memory space> [shape: f32[1,1], index: 0, kind: input, shape index: {}]   ;;  %s1477_s1 = inlined_call_operand.hbm [shape: f32[2,1024], index: 1, kind: input, shape index: {}]   ;;  %s1478_s2 = inlined_call_operand.hbm [shape: f32[2,8,128], index: 2, kind: input, shape index: {}]   ;;  %s1479_s3 = inlined_call_operand.hbm [shape: f32[1024,128], index: 3, kind: input, shape index: {}]   ;;  %s1480_s4 = inlined_call_operand.hbm [shape: f32[128,128], index: 4, kind: input, shape index: {}]   ;;  %s1481_s5 = inlined_call_operand.hbm [shape: f32[2,128], index: 5, kind: output, shape index: {0}]   ;;  %s1482_s6 = inlined_call_operand.hbm [shape: f32[2,128], index: 6, kind: output, shape index: {1}]   ;;  %s1483_s7 = inlined_call_operand.hbm [shape: f32[2,2], index: 7, kind: output, shape index: {2}]  }
   0x1   :  { %15 = vsyncpa [#allocation7], 0 }
   0x2   :  { %16 = vsyncpa [#allocation10], 0 }
   0x3   :  { %17 = vsyncpa [#allocation5], 0 }
   0x4   :  { %18 = vsyncpa [#allocation13], 0  ;;  %s1311_s24 = smov [#allocation6]   ;;  %s1147_s28 = scalar_lea.hbm %s1478_s2, 256 }
   0x5   :  { %s36_s25 = sshll.u32 %s1311_s24, 4  ;;  %p1148_p0 = scmp.ne.s32.totalorder %s1478_s2, %s1147_s28  ;;  %s37_s25 = int_to_ptr.vmem [resolvable:$true] %s36_s25 }
   0x6   :  { %p1151_p1 = scmp.lt.u32.totalorder %s1147_s28, %s1478_s2 }
   0x8   :  { %p1153_p2 = pnand %p1151_p1, %p1148_p0 }
   0xa   :  { %1156 = shalt.err (!%p1153_p2)
}
   0xb   :  { %s1157_s10 = scalar_lea.vmem %s37_s25, 256  ;;  %p1162_p4 = scmp.lt.s32.totalorder %s37_s25, %s37_s25 }
   0xc   :  { %p1158_p3 = scmp.ne.s32.totalorder %s37_s25, %s1157_s10  ;;  %p1163_p5 = scmp.lt.s32.totalorder %s1157_s10, %s1157_s10 }
   0xe   :  { %p1164_p6 = por %p1163_p5, %p1162_p4 }
  0x10   :  { %p1165_p7 = pnand %p1164_p6, %p1158_p3 }
  0x12   :  { %1168 = shalt.err (!%p1165_p7)
}
  0x13   :  { %s1312_s11 = smov 128   ;;  %s1313_s12 = smov 8  }
  0x14   :  { %42 = dma.hbm_to_vmem [thread:$0]  %s1478_s2, 256, %s37_s25, [#allocation7], %s1312_s11, %s1312_s11, %s1313_s12  }
  0x15   :  { %s1314_s15 = smov [#allocation3]   ;;  %s1315_s17 = smov [#allocation8]  }
  0x16   :  { %s27_s16 = sshll.u32 %s1314_s15, 4  ;;  %s48_s18 = sshll.u32 %s1315_s17, 4  ;;  %s28_s16 = int_to_ptr.vmem [resolvable:$true] %s27_s16  ;;  %s49_s18 = int_to_ptr.vmem [resolvable:$true] %s48_s18 }
  0x17   :  { %s1169_s21 = scalar_lea.hbm %s1477_s1, 256 }
  0x18   :  { %p1170_p8 = scmp.ne.s32.totalorder %s1477_s1, %s1169_s21  ;;  %p1173_p9 = scmp.lt.u32.totalorder %s1169_s21, %s1477_s1 }
  0x1a   :  { %p1175_p10 = pnand %p1173_p9, %p1170_p8 }
  0x1c   :  { %1178 = shalt.err (!%p1175_p10)
}
  0x1d   :  { %s1179_s2 = scalar_lea.vmem %s28_s16, 256  ;;  %p1184_p12 = scmp.lt.s32.totalorder %s28_s16, %s28_s16 }
  0x1e   :  { %p1180_p11 = scmp.ne.s32.totalorder %s28_s16, %s1179_s2  ;;  %p1185_p13 = scmp.lt.s32.totalorder %s1179_s2, %s1179_s2 }
  0x20   :  { %p1186_p0 = por %p1185_p13, %p1184_p12 }
  0x22   :  { %p1187_p1 = pnand %p1186_p0, %p1180_p11 }
  0x24   :  { %1190 = shalt.err (!%p1187_p1)
}
  0x25   :  { %30 = dma.hbm_to_vmem [thread:$0]  %s1477_s1, 256, %s28_s16, [#allocation4]  }
  0x26   :  { %s1191_s30 = scalar_lea.hbm %s1479_s3, 16384 }
  0x27   :  { %p1192_p2 = scmp.ne.s32.totalorder %s1479_s3, %s1191_s30  ;;  %p1195_p3 = scmp.lt.u32.totalorder %s1191_s30, %s1479_s3 }
  0x29   :  { %p1197_p4 = pnand %p1195_p3, %p1192_p2 }
  0x2b   :  { %1200 = shalt.err (!%p1197_p4)
}
  0x2c   :  { %s1201_s14 = scalar_lea.vmem %s49_s18, 16384  ;;  %p1206_p6 = scmp.lt.s32.totalorder %s49_s18, %s49_s18 }
  0x2d   :  { %p1202_p5 = scmp.ne.s32.totalorder %s49_s18, %s1201_s14  ;;  %p1207_p7 = scmp.lt.s32.totalorder %s1201_s14, %s1201_s14 }
  0x2f   :  { %p1208_p8 = por %p1207_p7, %p1206_p6 }
  0x31   :  { %p1209_p9 = pnand %p1208_p8, %p1202_p5 }
  0x33   :  { %1212 = shalt.err (!%p1209_p9)
}
  0x34   :  { %54 = dma.hbm_to_vmem [thread:$0]  %s1479_s3, 16384, %s49_s18, [#allocation7], %s1312_s11, %s1312_s11, %s1313_s12  }
  0x35   :  { %s1316_s16 = smov [#allocation9]   ;;  %s1213_s21 = scalar_lea.hbm %s1480_s4, 2048 }
  0x36   :  { %s60_s17 = sshll.u32 %s1316_s16, 4  ;;  %p1214_p10 = scmp.ne.s32.totalorder %s1480_s4, %s1213_s21  ;;  %s61_s17 = int_to_ptr.vmem [resolvable:$true] %s60_s17 }
  0x37   :  { %p1217_p11 = scmp.lt.u32.totalorder %s1213_s21, %s1480_s4 }
  0x39   :  { %p1219_p12 = pnand %p1217_p11, %p1214_p10 }
  0x3b   :  { %1222 = shalt.err (!%p1219_p12)
}
  0x3c   :  { %s1223_s2 = scalar_lea.vmem %s61_s17, 2048  ;;  %p1228_p0 = scmp.lt.s32.totalorder %s61_s17, %s61_s17 }
  0x3d   :  { %p1224_p13 = scmp.ne.s32.totalorder %s61_s17, %s1223_s2  ;;  %p1229_p1 = scmp.lt.s32.totalorder %s1223_s2, %s1223_s2 }
  0x3f   :  { %p1230_p2 = por %p1229_p1, %p1228_p0 }
  0x41   :  { %p1231_p3 = pnand %p1230_p2, %p1224_p13 }
  0x43   :  { %1234 = shalt.err (!%p1231_p3)
}
  0x44   :  { %66 = dma.hbm_to_vmem [thread:$0]  %s1480_s4, 2048, %s61_s17, [#allocation10], %s1312_s11, %s1312_s11, %s1313_s12  }
  0x45   :  { %1301 = dma.done.wait [#allocation4], 256  }
  0x46   :  { %1302 = vsyncadd [#allocation4], 4294967040 }
  0x47   :  { %1303 = dma.done.wait [#allocation7], 16640  }
  0x48   :  { %1304 = vsyncadd [#allocation7], 4294950656 }
  0x49   :  { %1305 = dma.done.wait [#allocation10], 2048  }
  0x4a   :  { %1306 = vsyncadd [#allocation10], 4294965248  ;;  %v97_v0 = vld [vmem:[#allocation8 + $0x80] sm:$0xff]  ;;  %v98_v1 = vld [vmem:[#allocation8 + $0x88] sm:$0xff]  ;;  %v1317_v47 = vmov 1983009808   ;;  %v215_v49 = vlaneseq }
  0x4b   :  { %v129_v2 = vld [vmem:[#allocation8 + $0x180] sm:$0xff]  ;;  %v976_v3 = vpack.c.bf16 %v98_v1, %v97_v0  ;;  %v130_v4 = vld [vmem:[#allocation8 + $0x188] sm:$0xff]  ;;  %v99_v11 = vld [vmem:[#allocation8 + $0x90] sm:$0xff]  ;;  %v213_v48 = vunpack.c.l.s4 %v1317_v47  ;;  %vm1320_vm0 = vmmov 0   ;;  %vm576_vm1 = vcmask 1041409   ;;  %s1321_s4 = smov [#allocation12]  }
  0x4c   :  { %v81_v5 = vld [vmem:[#allocation8] sm:$0xff]  ;;  %v82_v6 = vld [vmem:[#allocation8 + $0x8] sm:$0xff]  ;;  %v1008_v7 = vpack.c.bf16 %v130_v4, %v129_v2  ;;  %v100_v13 = vld [vmem:[#allocation8 + $0x98] sm:$0xff]  ;;  %v216_v0 = vshrl.u32 %v215_v49, 7  ;;  %vm534_vm2 = vcmask 1041408   ;;  %s749_s11 = sshll.u32 %s1321_s4, 4  ;;  %s750_s11 = int_to_ptr.vmem [resolvable:$true] %s749_s11 }
  0x4d   :  { %v978_v8 = vpack.c.bf16 %v82_v6, %v81_v5  ;;  %v113_v9 = vld [vmem:[#allocation8 + $0x100] sm:$0xff]  ;;  %v114_v10 = vld [vmem:[#allocation8 + $0x108] sm:$0xff]  ;;  %977 = vmatprep.subr.bf16.mxu0 %v976_v3  ;;  %v131_v14 = vld [vmem:[#allocation8 + $0x190] sm:$0xff]  ;;  %v980_v16 = vpack.c.bf16 %v100_v13, %v99_v11  ;;  %v214_v63 = vunpack.c.0.s8 %v213_v48  ;;  %s1322_s12 = smov [#allocation11]   ;;  %s1235_s27 = scalar_lea.vmem %s750_s11, 32 }
  0x4e   :  { %v1010_v12 = vpack.c.bf16 %v114_v10, %v113_v9  ;;  %v132_v15 = vld [vmem:[#allocation8 + $0x198] sm:$0xff]  ;;  %1009 = vmatprep.subr.bf16.mxu1 %v1008_v7  ;;  %v83_v18 = vld [vmem:[#allocation8 + $0x10] sm:$0xff]  ;;  %v101_v23 = vld [vmem:[#allocation8 + $0xa0] sm:$0xff]  ;;  %s739_s25 = sshll.u32 %s1322_s12, 4  ;;  %p1236_p4 = scmp.ne.s32.totalorder %s750_s11, %s1235_s27  ;;  %s740_s25 = int_to_ptr.vmem [resolvable:$true] %s739_s25 }
  0x4f   :  { %979 = vmatpush3.bf16.msra.mxu0 %v978_v8  ;;  %v1012_v17 = vpack.c.bf16 %v132_v15, %v131_v14  ;;  %v84_v19 = vld [vmem:[#allocation8 + $0x18] sm:$0xff]  ;;  %v115_v20 = vld [vmem:[#allocation8 + $0x110] sm:$0xff]  ;;  %v102_v24 = vld [vmem:[#allocation8 + $0xa8] sm:$0xff]  ;;  %v1421_v13 = vsub.s32 %v214_v63, %v216_v0  ;;  %p1240_p5 = scmp.lt.s32.totalorder %s750_s11, %s750_s11  ;;  %p1241_p6 = scmp.lt.s32.totalorder %s1235_s27, %s1235_s27 }
  0x50   :  { %1011 = vmatpush3.bf16.msra.mxu1 %v1010_v12  ;;  %v982_v21 = vpack.c.bf16 %v84_v19, %v83_v18  ;;  %v116_v22 = vld [vmem:[#allocation8 + $0x118] sm:$0xff]  ;;  %981 = vmatprep.subr.bf16.mxu0 %v980_v16  ;;  %v984_v26 = vpack.c.bf16 %v102_v24, %v101_v23  ;;  %v133_v27 = vld [vmem:[#allocation8 + $0x1a0] sm:$0xff]  ;;  %v134_v28 = vld [vmem:[#allocation8 + $0x1a8] sm:$0xff] }
  0x51   :  { %1013 = vmatprep.subr.bf16.mxu1 %v1012_v17  ;;  %v1014_v25 = vpack.c.bf16 %v116_v22, %v115_v20  ;;  %v85_v29 = vld [vmem:[#allocation8 + $0x20] sm:$0xff]  ;;  %v1016_v30 = vpack.c.bf16 %v134_v28, %v133_v27  ;;  %v86_v31 = vld [vmem:[#allocation8 + $0x28] sm:$0xff]  ;;  %v103_v35 = vld [vmem:[#allocation8 + $0xb0] sm:$0xff]  ;;  %p1242_p7 = por %p1241_p6, %p1240_p5 }
  0x52   :  { %v117_v32 = vld [vmem:[#allocation8 + $0x120] sm:$0xff]  ;;  %v118_v33 = vld [vmem:[#allocation8 + $0x128] sm:$0xff]  ;;  %v986_v34 = vpack.c.bf16 %v86_v31, %v85_v29  ;;  %v104_v36 = vld [vmem:[#allocation8 + $0xb8] sm:$0xff] }
  0x53   :  { %983 = vmatpush3.bf16.msra.mxu0 %v982_v21  ;;  %v135_v37 = vld [vmem:[#allocation8 + $0x1b0] sm:$0xff]  ;;  %v1018_v38 = vpack.c.bf16 %v118_v33, %v117_v32  ;;  %v988_v39 = vpack.c.bf16 %v104_v36, %v103_v35  ;;  %v136_v40 = vld [vmem:[#allocation8 + $0x1b8] sm:$0xff]  ;;  %v105_v46 = vld [vmem:[#allocation8 + $0xc0] sm:$0xff]  ;;  %p1243_p8 = pnand %p1242_p7, %p1236_p4 }
  0x54   :  { %1015 = vmatpush3.bf16.msra.mxu1 %v1014_v25  ;;  %985 = vmatprep.subr.bf16.mxu0 %v984_v26  ;;  %v87_v41 = vld [vmem:[#allocation8 + $0x30] sm:$0xff]  ;;  %v88_v42 = vld [vmem:[#allocation8 + $0x38] sm:$0xff]  ;;  %v1020_v43 = vpack.c.bf16 %v136_v40, %v135_v37  ;;  %v106_v50 = vld [vmem:[#allocation8 + $0xc8] sm:$0xff] }
  0x55   :  { %1017 = vmatprep.subr.bf16.mxu1 %v1016_v30  ;;  %v119_v44 = vld [vmem:[#allocation8 + $0x130] sm:$0xff]  ;;  %v120_v45 = vld [vmem:[#allocation8 + $0x138] sm:$0xff]  ;;  %v137_v51 = vld [vmem:[#allocation8 + $0x1c0] sm:$0xff]  ;;  %v990_v53 = vpack.c.bf16 %v88_v42, %v87_v41  ;;  %v992_v55 = vpack.c.bf16 %v106_v50, %v105_v46 }
  0x56   :  { %v138_v52 = vld [vmem:[#allocation8 + $0x1c8] sm:$0xff]  ;;  %v1022_v54 = vpack.c.bf16 %v120_v45, %v119_v44  ;;  %v89_v56 = vld [vmem:[#allocation8 + $0x40] sm:$0xff]  ;;  %v107_v61 = vld [vmem:[#allocation8 + $0xd0] sm:$0xff] }
  0x57   :  { %987 = vmatpush3.bf16.msra.mxu0 %v986_v34  ;;  %v90_v57 = vld [vmem:[#allocation8 + $0x48] sm:$0xff]  ;;  %v121_v58 = vld [vmem:[#allocation8 + $0x140] sm:$0xff]  ;;  %v1024_v59 = vpack.c.bf16 %v138_v52, %v137_v51  ;;  %v108_v62 = vld [vmem:[#allocation8 + $0xd8] sm:$0xff] }
  0x58   :  { %1019 = vmatpush3.bf16.msra.mxu1 %v1018_v38  ;;  %989 = vmatprep.subr.bf16.mxu0 %v988_v39  ;;  %v122_v60 = vld [vmem:[#allocation8 + $0x148] sm:$0xff]  ;;  %v139_v1 = vld [vmem:[#allocation8 + $0x1d0] sm:$0xff]  ;;  %v140_v2 = vld [vmem:[#allocation8 + $0x1d8] sm:$0xff]  ;;  %v994_v3 = vpack.c.bf16 %v90_v57, %v89_v56  ;;  %v996_v5 = vpack.c.bf16 %v108_v62, %v107_v61 }
  0x59   :  { %1021 = vmatprep.subr.bf16.mxu1 %v1020_v43  ;;  %v1026_v4 = vpack.c.bf16 %v122_v60, %v121_v58  ;;  %v91_v6 = vld [vmem:[#allocation8 + $0x50] sm:$0xff]  ;;  %v92_v7 = vld [vmem:[#allocation8 + $0x58] sm:$0xff]  ;;  %v1028_v9 = vpack.c.bf16 %v140_v2, %v139_v1  ;;  %v109_v11 = vld [vmem:[#allocation8 + $0xe0] sm:$0xff] }
  0x5a   :  { %v123_v8 = vld [vmem:[#allocation8 + $0x150] sm:$0xff]  ;;  %v124_v10 = vld [vmem:[#allocation8 + $0x158] sm:$0xff]  ;;  %v110_v12 = vld [vmem:[#allocation8 + $0xe8] sm:$0xff]  ;;  %v998_v16 = vpack.c.bf16 %v92_v7, %v91_v6 }
  0x5b   :  { %991 = vmatpush3.bf16.msra.mxu0 %v990_v53  ;;  %v141_v14 = vld [vmem:[#allocation8 + $0x1e0] sm:$0xff]  ;;  %v142_v15 = vld [vmem:[#allocation8 + $0x1e8] sm:$0xff]  ;;  %v1030_v18 = vpack.c.bf16 %v124_v10, %v123_v8  ;;  %v1000_v19 = vpack.c.bf16 %v110_v12, %v109_v11  ;;  %v111_v25 = vld [vmem:[#allocation8 + $0xf0] sm:$0xff] }
  0x5c   :  { %1023 = vmatpush3.bf16.msra.mxu1 %v1022_v54  ;;  %993 = vmatprep.subr.bf16.mxu0 %v992_v55  ;;  %v93_v17 = vld [vmem:[#allocation8 + $0x60] sm:$0xff]  ;;  %v94_v20 = vld [vmem:[#allocation8 + $0x68] sm:$0xff]  ;;  %v1032_v23 = vpack.c.bf16 %v142_v15, %v141_v14  ;;  %v112_v26 = vld [vmem:[#allocation8 + $0xf8] sm:$0xff] }
  0x5d   :  { %1025 = vmatprep.subr.bf16.mxu1 %v1024_v59  ;;  %v125_v21 = vld [vmem:[#allocation8 + $0x160] sm:$0xff]  ;;  %v126_v24 = vld [vmem:[#allocation8 + $0x168] sm:$0xff]  ;;  %v143_v29 = vld [vmem:[#allocation8 + $0x1f0] sm:$0xff]  ;;  %v1002_v31 = vpack.c.bf16 %v94_v20, %v93_v17  ;;  %v1004_v35 = vpack.c.bf16 %v112_v26, %v111_v25 }
  0x5e   :  { %v79_v22 = vld [vmem:[#allocation3] sm:$0xff]  ;;  %v144_v30 = vld [vmem:[#allocation8 + $0x1f8] sm:$0xff]  ;;  %v1034_v34 = vpack.c.bf16 %v126_v24, %v125_v21  ;;  %v95_v36 = vld [vmem:[#allocation8 + $0x70] sm:$0xff] }
  0x5f   :  { %995 = vmatpush3.bf16.msra.mxu0 %v994_v3  ;;  %v218_v27 = vrot.slane %v79_v22, %v1421_v13  ;;  %v211_v28 = vcombine.high %v79_v22, %v79_v22  ;;  %v96_v37 = vld [vmem:[#allocation8 + $0x78] sm:$0xff]  ;;  %v127_v38 = vld [vmem:[#allocation8 + $0x170] sm:$0xff]  ;;  %v1036_v39 = vpack.c.bf16 %v144_v30, %v143_v29  ;;  %v161_v42 = vld [vmem:[#allocation8 + $0x280] sm:$0xff] }
  0x60   :  { %1027 = vmatpush3.bf16.msra.mxu1 %v1026_v4  ;;  %997 = vmatprep.subr.bf16.mxu0 %v996_v5  ;;  %v128_v40 = vld [vmem:[#allocation8 + $0x178] sm:$0xff]  ;;  %v162_v43 = vld [vmem:[#allocation8 + $0x288] sm:$0xff]  ;;  %v193_v44 = vld [vmem:[#allocation8 + $0x380] sm:$0xff]  ;;  %v1006_v46 = vpack.c.bf16 %v96_v37, %v95_v36 }
  0x61   :  { %1029 = vmatprep.subr.bf16.mxu1 %v1028_v9  ;;  %v226_v32 = vcombine.high %v218_v27, %v218_v27  ;;  %v225_v33 = vrot.slane %v211_v28, %v1421_v13  ;;  %v194_v45 = vld [vmem:[#allocation8 + $0x388] sm:$0xff]  ;;  %v1038_v47 = vpack.c.bf16 %v128_v40, %v127_v38  ;;  %v1040_v48 = vpack.c.bf16 %v162_v43, %v161_v42  ;;  %v145_v49 = vld [vmem:[#allocation8 + $0x200] sm:$0xff]  ;;  %v163_v54 = vld [vmem:[#allocation8 + $0x290] sm:$0xff] }
  0x62   :  { %v146_v50 = vld [vmem:[#allocation8 + $0x208] sm:$0xff]  ;;  %v177_v51 = vld [vmem:[#allocation8 + $0x300] sm:$0xff]  ;;  %v1072_v52 = vpack.c.bf16 %v194_v45, %v193_v44  ;;  %v164_v55 = vld [vmem:[#allocation8 + $0x298] sm:$0xff] }
  0x63   :  { %999 = vmatpush3.bf16.msra.mxu0 %v998_v16  ;;  %317 = vmatprep.mubr.f32.mxu0 %v226_v32  ;;  %v227_v41 = vcombine.high %v225_v33, %v225_v33  ;;  %v178_v53 = vld [vmem:[#allocation8 + $0x308] sm:$0xff]  ;;  %v195_v56 = vld [vmem:[#allocation8 + $0x390] sm:$0xff]  ;;  %v196_v57 = vld [vmem:[#allocation8 + $0x398] sm:$0xff]  ;;  %v1042_v58 = vpack.c.bf16 %v146_v50, %v145_v49  ;;  %v1044_v60 = vpack.c.bf16 %v164_v55, %v163_v54 }
  0x64   :  { %1031 = vmatpush3.bf16.msra.mxu1 %v1030_v18  ;;  %1001 = vmatprep.subr.bf16.mxu0 %v1000_v19  ;;  %v1074_v59 = vpack.c.bf16 %v178_v53, %v177_v51  ;;  %v147_v61 = vld [vmem:[#allocation8 + $0x210] sm:$0xff]  ;;  %v148_v62 = vld [vmem:[#allocation8 + $0x218] sm:$0xff]  ;;  %v1076_v0 = vpack.c.bf16 %v196_v57, %v195_v56  ;;  %v165_v2 = vld [vmem:[#allocation8 + $0x2a0] sm:$0xff] }
  0x65   :  { %1033 = vmatprep.subr.bf16.mxu1 %v1032_v23  ;;  %387 = vmatprep.mubr.f32.mxu1 %v227_v41  ;;  %v179_v63 = vld [vmem:[#allocation8 + $0x310] sm:$0xff]  ;;  %v180_v1 = vld [vmem:[#allocation8 + $0x318] sm:$0xff]  ;;  %v166_v3 = vld [vmem:[#allocation8 + $0x2a8] sm:$0xff]  ;;  %v1046_v6 = vpack.c.bf16 %v148_v62, %v147_v61 }
  0x66   :  { %v197_v4 = vld [vmem:[#allocation8 + $0x3a0] sm:$0xff]  ;;  %v198_v5 = vld [vmem:[#allocation8 + $0x3a8] sm:$0xff]  ;;  %v1078_v7 = vpack.c.bf16 %v180_v1, %v179_v63  ;;  %v1048_v8 = vpack.c.bf16 %v166_v3, %v165_v2  ;;  %v167_v15 = vld [vmem:[#allocation8 + $0x2b0] sm:$0xff] }
  0x67   :  { %1003 = vmatpush3.bf16.msra.mxu0 %v1002_v31  ;;  %v149_v9 = vld [vmem:[#allocation8 + $0x220] sm:$0xff]  ;;  %v150_v10 = vld [vmem:[#allocation8 + $0x228] sm:$0xff]  ;;  %v1080_v12 = vpack.c.bf16 %v198_v5, %v197_v4  ;;  %v168_v16 = vld [vmem:[#allocation8 + $0x2b8] sm:$0xff] }
  0x68   :  { %1035 = vmatpush3.bf16.msra.mxu1 %v1034_v34  ;;  %1005 = vmatprep.subr.bf16.mxu0 %v1004_v35  ;;  %v181_v11 = vld [vmem:[#allocation8 + $0x320] sm:$0xff]  ;;  %v182_v14 = vld [vmem:[#allocation8 + $0x328] sm:$0xff]  ;;  %v199_v17 = vld [vmem:[#allocation8 + $0x3b0] sm:$0xff]  ;;  %v1050_v19 = vpack.c.bf16 %v150_v10, %v149_v9  ;;  %v1052_v22 = vpack.c.bf16 %v168_v16, %v167_v15 }
  0x69   :  { %1037 = vmatprep.subr.bf16.mxu1 %v1036_v39  ;;  %v200_v18 = vld [vmem:[#allocation8 + $0x3b8] sm:$0xff]  ;;  %v151_v20 = vld [vmem:[#allocation8 + $0x230] sm:$0xff]  ;;  %v1082_v21 = vpack.c.bf16 %v182_v14, %v181_v11  ;;  %v170_v28 = vld [vmem:[#allocation8 + $0x2c8] sm:$0xff] }
  0x6a   :  { %v152_v23 = vld [vmem:[#allocation8 + $0x238] sm:$0xff]  ;;  %v183_v24 = vld [vmem:[#allocation8 + $0x330] sm:$0xff]  ;;  %v1084_v26 = vpack.c.bf16 %v200_v18, %v199_v17  ;;  %v80_v29 = vld [vmem:[#allocation3 + $0x8] sm:$0xff] }
  0x6b   :  { %1007 = vmatpush3.bf16.msra.mxu0 %v1006_v46  ;;  %v184_v25 = vld [vmem:[#allocation8 + $0x338] sm:$0xff]  ;;  %v201_v30 = vld [vmem:[#allocation8 + $0x3c0] sm:$0xff]  ;;  %v202_v31 = vld [vmem:[#allocation8 + $0x3c8] sm:$0xff]  ;;  %v1426_v32 = vrot.slane %v80_v29, %v1421_v13  ;;  %v1054_v34 = vpack.c.bf16 %v152_v23, %v151_v20  ;;  %v1318_v23 = vmov 0.0|0.0  }
  0x6c   :  { %1039 = vmatpush3.bf16.msra.mxu1 %v1038_v47  ;;  %1041 = vmatprep.subr.bf16.mxu0 %v1040_v48  ;;  %v1086_v35 = vpack.c.bf16 %v184_v25, %v183_v24  ;;  %v153_v37 = vld [vmem:[#allocation8 + $0x240] sm:$0xff]  ;;  %v154_v38 = vld [vmem:[#allocation8 + $0x248] sm:$0xff]  ;;  %v1088_v42 = vpack.c.bf16 %v202_v31, %v201_v30  ;;  %v171_v44 = vld [vmem:[#allocation8 + $0x2d0] sm:$0xff] }
  0x6d   :  { %1073 = vmatprep.subr.bf16.mxu1 %v1072_v52  ;;  %v185_v39 = vld [vmem:[#allocation8 + $0x340] sm:$0xff]  ;;  %v243_v40 = vcombine.high %v1426_v32, %v1426_v32  ;;  %v186_v43 = vld [vmem:[#allocation8 + $0x348] sm:$0xff]  ;;  %v172_v45 = vld [vmem:[#allocation8 + $0x2d8] sm:$0xff]  ;;  %v1058_v49 = vpack.c.bf16 %v154_v38, %v153_v37 }
  0x6e   :  { %318 = vmatmul.mubr.f32.vlgmr.msra.gmra.mrb[0].mxu0 %v218_v27  ;;  %v169_v27 = vld [vmem:[#allocation8 + $0x2c0] sm:$0xff]  ;;  %v203_v46 = vld [vmem:[#allocation8 + $0x3d0] sm:$0xff]  ;;  %v204_v47 = vld [vmem:[#allocation8 + $0x3d8] sm:$0xff]  ;;  %v1090_v50 = vpack.c.bf16 %v186_v43, %v185_v39  ;;  %v1060_v51 = vpack.c.bf16 %v172_v45, %v171_v44 }
  0x6f   :  { %388 = vmatmul.mubr.f32.vlgmr.msra.gmra.mrb[0].mxu1 %v225_v33  ;;  %1043 = vmatpush3.bf16.msra.mxu0 %v1042_v58  ;;  %v228_v33 = vcombine.high %v80_v29, %v80_v29  ;;  %v1056_v36 = vpack.c.bf16 %v170_v28, %v169_v27  ;;  %v155_v52 = vld [vmem:[#allocation8 + $0x250] sm:$0xff]  ;;  %v1092_v54 = vpack.c.bf16 %v204_v47, %v203_v46  ;;  %v188_v55 = vld [vmem:[#allocation8 + $0x358] sm:$0xff]  ;;  %v173_v56 = vld [vmem:[#allocation8 + $0x2e0] sm:$0xff]  ;;  %v1319_v27 = vmov 0.0  }
  0x70   :  { %1075 = vmatpush3.bf16.msra.mxu1 %v1074_v59  ;;  %1045 = vmatprep.subr.bf16.mxu0 %v1044_v60  ;;  %v187_v53 = vld [vmem:[#allocation8 + $0x350] sm:$0xff]  ;;  %v174_v57 = vld [vmem:[#allocation8 + $0x2e8] sm:$0xff]  ;;  %v205_v58 = vld [vmem:[#allocation8 + $0x3e0] sm:$0xff] }
  0x71   :  { %1077 = vmatprep.subr.bf16.mxu1 %v1076_v0  ;;  %v1431_v41 = vrot.slane %v228_v33, %v1421_v13  ;;  %457 = vmatprep.mubr.f32.mxu0 %v243_v40  ;;  %v156_v13 = vld [vmem:[#allocation8 + $0x258] sm:$0xff]  ;;  %v206_v59 = vld [vmem:[#allocation8 + $0x3e8] sm:$0xff]  ;;  %v1094_v61 = vpack.c.bf16 %v188_v55, %v187_v53  ;;  %v1064_v62 = vpack.c.bf16 %v174_v57, %v173_v56  ;;  %v157_v63 = vld [vmem:[#allocation8 + $0x260] sm:$0xff] }
  0x72   :  { %v1062_v60 = vpack.c.bf16 %v156_v13, %v155_v52  ;;  %v158_v0 = vld [vmem:[#allocation8 + $0x268] sm:$0xff]  ;;  %v189_v1 = vld [vmem:[#allocation8 + $0x360] sm:$0xff]  ;;  %v1096_v2 = vpack.c.bf16 %v206_v59, %v205_v58  ;;  %v175_v4 = vld [vmem:[#allocation8 + $0x2f0] sm:$0xff] }
  0x73   :  { %1047 = vmatpush3.bf16.msra.mxu0 %v1046_v6  ;;  %v244_v48 = vcombine.high %v1431_v41, %v1431_v41  ;;  %v190_v3 = vld [vmem:[#allocation8 + $0x368] sm:$0xff]  ;;  %v176_v5 = vld [vmem:[#allocation8 + $0x2f8] sm:$0xff]  ;;  %v207_v6 = vld [vmem:[#allocation8 + $0x3f0] sm:$0xff] }
  0x74   :  { %1079 = vmatpush3.bf16.msra.mxu1 %v1078_v7  ;;  %1049 = vmatprep.subr.bf16.mxu0 %v1048_v8  ;;  %v208_v7 = vld [vmem:[#allocation8 + $0x3f8] sm:$0xff]  ;;  %v1066_v8 = vpack.c.bf16 %v158_v0, %v157_v63  ;;  %v1098_v9 = vpack.c.bf16 %v190_v3, %v189_v1  ;;  %v1068_v10 = vpack.c.bf16 %v176_v5, %v175_v4  ;;  %v159_v11 = vld [vmem:[#allocation8 + $0x270] sm:$0xff]  ;;  %v559_v20 = vld [vmem:[#allocation9 + $0x8] sm:$0xff] }
  0x75   :  { %1081 = vmatprep.subr.bf16.mxu1 %v1080_v12  ;;  %527 = vmatprep.mubr.f32.mxu1 %v244_v48  ;;  %v160_v12 = vld [vmem:[#allocation8 + $0x278] sm:$0xff]  ;;  %v1100_v14 = vpack.c.bf16 %v208_v7, %v207_v6  ;;  %v191_v15 = vld [vmem:[#allocation8 + $0x370] sm:$0xff]  ;;  %v562_v31 = vld [vmem:[#allocation9 + $0x20] sm:$0xff] }
  0x76   :  { %v192_v16 = vld [vmem:[#allocation8 + $0x378] sm:$0xff]  ;;  %v1070_v17 = vpack.c.bf16 %v160_v12, %v159_v11  ;;  %v541_v25 = vld [vmem:[#allocation6] sm:$0xff]  ;;  %v563_v33 = vld [vmem:[#allocation9 + $0x28] sm:$0xff] }
  0x77   :  { %1051 = vmatpush3.bf16.msra.mxu0 %v1050_v19  ;;  %v1102_v18 = vpack.c.bf16 %v192_v16, %v191_v15  ;;  %v558_v19 = vld [vmem:[#allocation9] sm:$0xff]  ;;  %v561_v24 = vld [vmem:[#allocation9 + $0x18] sm:$0xff]  ;;  %v543_v29 = vrot.slane %v541_v25, 4  ;;  %v564_v37 = vld [vmem:[#allocation9 + $0x30] sm:$0xff] }
  0x78   :  { %1083 = vmatpush3.bf16.msra.mxu1 %v1082_v21  ;;  %1053 = vmatprep.subr.bf16.mxu0 %v1052_v22  ;;  %v1105_v21 = vpack.c.bf16 %v559_v20, %v558_v19  ;;  %v560_v22 = vld [vmem:[#allocation9 + $0x10] sm:$0xff]  ;;  %v565_v38 = vld [vmem:[#allocation9 + $0x38] sm:$0xff]  ;;  %v571_v52 = vld [vmem:[#allocation9 + $0x68] sm:$0xff] }
  0x79   :  { %1085 = vmatprep.subr.bf16.mxu1 %v1084_v26  ;;  %v542_v26 = vld [vmem:[#allocation6 + $0x8] sm:$0xff]  ;;  %v1108_v28 = vpack.c.bf16 %v561_v24, %v560_v22  ;;  %v568_v46 = vld [vmem:[#allocation9 + $0x50] sm:$0xff] }
  0x7a   :  { %v549_v30 = vrot.slane %v542_v26, 4  ;;  %v569_v47 = vld [vmem:[#allocation9 + $0x58] sm:$0xff]  ;;  %v572_v55 = vld [vmem:[#allocation9 + $0x70] sm:$0xff] }
  0x7b   :  { %1055 = vmatpush3.bf16.msra.mxu0 %v1054_v34  ;;  %v1111_v34 = vpack.c.bf16 %v563_v33, %v562_v31  ;;  %v1120_v48 = vpack.c.bf16 %v569_v47, %v568_v46  ;;  %v573_v56 = vld [vmem:[#allocation9 + $0x78] sm:$0xff] }
  0x7c   :  { %1087 = vmatpush3.bf16.msra.mxu1 %v1086_v35  ;;  %1057 = vmatprep.subr.bf16.mxu0 %v1056_v36  ;;  %v544_v35 = vadd.f32 %v543_v29, %v541_v25  ;;  %v550_v36 = vadd.f32 %v549_v30, %v542_v26  ;;  %v1126_v57 = vpack.c.bf16 %v573_v56, %v572_v55 }
  0x7d   :  { %1089 = vmatprep.subr.bf16.mxu1 %v1088_v42  ;;  %v567_v42 = vld [vmem:[#allocation9 + $0x48] sm:$0xff] }
  0x7e   :  { %v545_v39 = vrot.slane %v544_v35, 2  ;;  %v551_v40 = vrot.slane %v550_v36, 2 }
  0x7f   :  { %1059 = vmatpush3.bf16.msra.mxu0 %v1058_v49 }
  0x80   :  { %1091 = vmatpush3.bf16.msra.mxu1 %v1090_v50  ;;  %1061 = vmatprep.subr.bf16.mxu0 %v1060_v51  ;;  %v546_v44 = vadd.f32 %v545_v39, %v544_v35  ;;  %v552_v45 = vadd.f32 %v551_v40, %v550_v36  ;;  %v570_v51 = vld [vmem:[#allocation9 + $0x60] sm:$0xff] }
  0x81   :  { %1093 = vmatprep.subr.bf16.mxu1 %v1092_v54  ;;  %v1123_v13 = vpack.c.bf16 %v571_v52, %v570_v51 }
  0x82   :  { %v547_v49 = vrot.slane %v546_v44, 1  ;;  %v553_v50 = vrot.slane %v552_v45, 1 }
  0x83   :  { %1063 = vmatpush3.bf16.msra.mxu0 %v1062_v60 }
  0x84   :  { %1095 = vmatpush3.bf16.msra.mxu1 %v1094_v61  ;;  %1065 = vmatprep.subr.bf16.mxu0 %v1064_v62  ;;  %v548_v53 = vadd.f32 %v547_v49, %v546_v44  ;;  %v554_v54 = vadd.f32 %v553_v50, %v552_v45 }
  0x85   :  { %1097 = vmatprep.subr.bf16.mxu1 %v1096_v2 }
  0x86   :  { %v556_v58 = vmul.f32 0.125, %v548_v53  ;;  %v557_v59 = vmul.f32 0.125, %v554_v54 }
  0x87   :  { %1067 = vmatpush3.bf16.msra.mxu0 %v1066_v8 }
  0x88   :  { %1099 = vmatpush3.bf16.msra.mxu1 %v1098_v9  ;;  %1069 = vmatprep.subr.bf16.mxu0 %v1068_v10  ;;  %v577_v60 = vsel %vm576_vm1, %v557_v59, %v556_v58 }
  0x89   :  { %1101 = vmatprep.subr.bf16.mxu1 %v1100_v14 }
  0x8b   :  { %1071 = vmatpush3.bf16.msra.mxu0 %v1070_v17 }
  0x8c   :  { %1103 = vmatpush3.bf16.msra.mxu1 %v1102_v18  ;;  %1104 = vmatprep.subr.bf16.mxu0 %v1318_v23 }
  0x8d   :  { %971 = vmatprep.subr.mxu1 %v1319_v27 }
  0x8e   :  { %458 = vmatmul.mubr.f32.vlgmr.msra.gmra.mrb[2].mxu0 %v1426_v32  ;;  %v1114_v32 = vpack.c.bf16 %v565_v38, %v564_v37 }
  0x8f   :  { %1106 = vmatpush3.bf16.msra.mxu0 %v1105_v21  ;;  %528 = vmatmul.mubr.f32.vlgmr.msra.gmra.mrb[2].mxu1 %v1431_v41  ;;  %v566_v41 = vld [vmem:[#allocation9 + $0x40] sm:$0xff] }
  0x90   :  { %1107 = vmatprep.subr.bf16.mxu0 %v1318_v23  ;;  %968 = vmatprep.mubr.msk.f32.mxu0 %vm1320_vm0, %v1319_v27  ;;  %v1117_v43 = vpack.c.bf16 %v567_v42, %v566_v41 }
  0x91   :  { %973 = vmatprep.mubr.msk.f32.mxu1 %vm1320_vm0, %v1319_v27 }
  0x93   :  { %1109 = vmatpush3.bf16.msra.mxu0 %v1108_v28 }
  0x94   :  { %1110 = vmatprep.subr.bf16.mxu0 %v1318_v23 }
  0x97   :  { %1112 = vmatpush3.bf16.msra.mxu0 %v1111_v34 }
  0x98   :  { %1113 = vmatprep.subr.bf16.mxu0 %v1318_v23 }
  0x9b   :  { %1115 = vmatpush3.bf16.msra.mxu0 %v1114_v32 }
  0x9c   :  { %1116 = vmatprep.subr.bf16.mxu0 %v1318_v23 }
  0x9f   :  { %1118 = vmatpush3.bf16.msra.mxu0 %v1117_v43 }
  0xa0   :  { %1119 = vmatprep.subr.bf16.mxu0 %v1318_v23 }
  0xa3   :  { %1121 = vmatpush3.bf16.msra.mxu0 %v1120_v48 }
  0xa4   :  { %1122 = vmatprep.subr.bf16.mxu0 %v1318_v23 }
  0xa7   :  { %1124 = vmatpush3.bf16.msra.mxu0 %v1123_v13 }
  0xa8   :  { %1125 = vmatprep.subr.bf16.mxu0 %v1318_v23 }
  0xab   :  { %1127 = vmatpush3.bf16.msra.mxu0 %v1126_v57 }
  0xae   :  { %969 = vmatmul.mubr.f32.vlgmr.msra.gmra.mrb[4].mxu0 %v577_v60 }
 0x141   :  { %v809_v61 = vpop.f32.mrb[0].mxu0 }
 0x142   :  { %v844_v62 = vpop.f32.mrb[0].mxu1  ;;  %v810_v63 = vpop.f32.mrb[1].mxu0 }
 0x143   :  { %v811_v0 = vadd.f32 %v810_v63, %v809_v61  ;;  %v845_v1 = vpop.f32.mrb[1].mxu1 }
 0x144   :  { %v846_v2 = vadd.f32 %v845_v1, %v844_v62 }
 0x146   :  { %v390_v3 = vadd.f32 %v846_v2, %v811_v0 }
 0x161   :  { %v879_v4 = vpop.f32.mrb[2].mxu0 }
 0x162   :  { %v880_v5 = vpop.f32.mrb[3].mxu0  ;;  %v914_v6 = vpop.f32.mrb[2].mxu1 }
 0x163   :  { %v881_v7 = vadd.f32 %v880_v5, %v879_v4  ;;  %v915_v8 = vpop.f32.mrb[3].mxu1 }
 0x164   :  { %v916_v9 = vadd.f32 %v915_v8, %v914_v6 }
 0x165   :  { %v460_v10 = vadd.f32 %v881_v7, %v390_v3 }
 0x167   :  { %v530_v11 = vadd.f32 %v916_v9, %v460_v10 }
 0x169   :  { %v533_v17 = vmul.f32 %v530_v11, %v530_v11 }
 0x16b   :  { %v535_v18 = vsel %vm534_vm2, %v533_v17, 0.0 }
 0x181   :  { %v645_v12 = vpop.f32.mrb[4].mxu0 }
 0x182   :  { %v970_v14 = vpop.f32.mrb[5].mxu0  ;;  %v649_v15 = vmul.f32 %v645_v12, %v645_v12 }
 0x184   :  { %v650_v16 = vsel %vm534_vm2, %v649_v15, 0.0 }
 0x185   :  { %651 = vadd.xlane.f32.xlu0 %v650_v16 }
 0x189   :  { %536 = vadd.xlane.f32.xlu0 %v535_v18 }
 0x212   :  { %v652_v19 = vpop.xlane.xlu0 %651 }
 0x213   :  { %v653_v20 = vadd.f32 1e-12, %v652_v19 }
 0x215   :  { %1143 = vrsqrt.f32 %v653_v20 }
 0x216   :  { %v537_v21 = vpop.xlane.xlu0 %536 }
 0x217   :  { %v538_v22 = vadd.f32 1e-12, %v537_v21 }
 0x219   :  { %1145 = vrsqrt.f32 %v538_v22 }
 0x21f   :  { %v1144_v23 = vpop.eup %1143 }
 0x220   :  { %v655_v24 = vmul.f32 %v1144_v23, %v645_v12 }
 0x222   :  { %972 = vmatpush3.xpose.msra.mxu1 %v655_v24  ;;  %657 = vst [vmem:[#allocation12] sm:$0x3] %v655_v24 }
 0x223   :  { %v1146_v25 = vpop.eup %1145 }
 0x224   :  { %v540_v26 = vmul.f32 %v1146_v25, %v530_v11 }
 0x226   :  { %974 = vmatmul.mubr.f32.vlgmr.msra.gmra.mrb[4].mxu1 %v540_v26  ;;  %656 = vst [vmem:[#allocation11] sm:$0x3] %v540_v26 }
 0x227   :  { %1246 = shalt.err (!%p1243_p8)
}
 0x228   :  { %s1247_s30 = scalar_lea.hbm %s1482_s6, 32 }
 0x229   :  { %p1248_p9 = scmp.ne.s32.totalorder %s1482_s6, %s1247_s30  ;;  %p1251_p10 = scmp.lt.u32.totalorder %s1247_s30, %s1482_s6 }
 0x22b   :  { %p1253_p11 = pnand %p1251_p10, %p1248_p9 }
 0x22d   :  { %1256 = shalt.err (!%p1253_p11)
}
 0x22e   :  { %752 = dma.vmem_to_hbm [thread:$0]  %s750_s11, 32, %s1482_s6, [#allocation13]  }
 0x22f   :  { %s1257_s15 = scalar_lea.vmem %s740_s25, 32  ;;  %p1262_p13 = scmp.lt.s32.totalorder %s740_s25, %s740_s25 }
 0x230   :  { %p1258_p12 = scmp.ne.s32.totalorder %s740_s25, %s1257_s15  ;;  %p1263_p0 = scmp.lt.s32.totalorder %s1257_s15, %s1257_s15 }
 0x232   :  { %p1264_p1 = por %p1263_p0, %p1262_p13 }
 0x234   :  { %p1265_p2 = pnand %p1264_p1, %p1258_p12 }
 0x236   :  { %1268 = shalt.err (!%p1265_p2)
}
 0x237   :  { %s1269_s19 = scalar_lea.hbm %s1481_s5, 32 }
 0x238   :  { %p1270_p3 = scmp.ne.s32.totalorder %s1481_s5, %s1269_s19  ;;  %p1273_p4 = scmp.lt.u32.totalorder %s1269_s19, %s1481_s5 }
 0x23a   :  { %p1275_p5 = pnand %p1273_p4, %p1270_p3 }
 0x23c   :  { %1278 = shalt.err (!%p1275_p5)
}
 0x23d   :  { %742 = dma.vmem_to_hbm [thread:$0]  %s740_s25, 32, %s1481_s5, [#allocation5]   ;;  %v729_v27 = vstv %s1476_s0  ;;  %vm731_vm3 = vcmask 9216  }
 0x23e   :  { %s1323_s3 = smov [#allocation14]  }
 0x23f   :  { %s759_s18 = sshll.u32 %s1323_s3, 4  ;;  %s760_s18 = int_to_ptr.vmem [resolvable:$true] %s759_s18 }
 0x240   :  { %s1279_s4 = scalar_lea.vmem %s760_s18, 32  ;;  %p1284_p7 = scmp.lt.s32.totalorder %s760_s18, %s760_s18 }
 0x241   :  { %p1280_p6 = scmp.ne.s32.totalorder %s760_s18, %s1279_s4  ;;  %p1285_p8 = scmp.lt.s32.totalorder %s1279_s4, %s1279_s4 }
 0x243   :  { %p1286_p9 = por %p1285_p8, %p1284_p7 }
 0x245   :  { %p1287_p10 = pnand %p1286_p9, %p1280_p6 }
 0x2f9   :  { %v724_v28 = vpop.f32.mrb[4].mxu1 }
 0x2fa   :  { %v730_v29 = vmul.f32 %v729_v27, %v724_v28  ;;  %v975_v30 = vpop.f32.mrb[5].mxu1 }
 0x2fc   :  { %732 = vst.msk [vmem:[#allocation14] sm:$0x3] %vm731_vm3, %v730_v29 }
 0x2fd   :  { %1290 = shalt.err (!%p1287_p10)
}
 0x2fe   :  { %s1291_s12 = scalar_lea.hbm %s1483_s7, 32 }
 0x2ff   :  { %p1292_p11 = scmp.ne.s32.totalorder %s1483_s7, %s1291_s12  ;;  %p1295_p12 = scmp.lt.u32.totalorder %s1291_s12, %s1483_s7 }
 0x301   :  { %p1297_p13 = pnand %p1295_p12, %p1292_p11 }
 0x303   :  { %1300 = shalt.err (!%p1297_p13)
}
 0x304   :  { %762 = dma.vmem_to_hbm [thread:$0]  %s760_s18, 32, %s1483_s7, [#allocation13]  }
 0x305   :  { %1307 = dma.done.wait [#allocation5], 32  }
 0x306   :  { %1308 = vsyncadd [#allocation5], 4294967264 }
 0x307   :  { %1309 = dma.done.wait [#allocation13], 64  }
 0x308   :  { %1310 = vsyncadd [#allocation13], 4294967232 }
 0x309   :  { %772 = vsyncpa [#allocation4], 1 }
 0x30a   :  { %773 = vsyncpa [#allocation7], 1 }
 0x30b   :  { %774 = vsyncpa [#allocation10], 1 }
 0x30c   :  { %775 = vsyncpa [#allocation5], 1 }
 0x30d   :  { %776 = vsyncpa [#allocation13], 1 }

</bundles_post_ra>
